<compile_context>
chip_gen: v7x
topology: tpu7x:2x2x1
jax: 0.10.0
libtpu: 0.0.40
codegen_flags: <defaults>
</compile_context>

<pallas_src>
import functools

import jax
import jax.numpy as jnp
from jax import lax
from jax.experimental import pallas as pl
from jax.experimental.pallas import tpu as pltpu


# ------------------------------ Pallas kernel ------------------------------ #
def _patch_embed_kernel(x_ref, s_ref, w_ref, b_ref, o_ref, x2_s, p_s, *,
                        in_chans, p_h, p_w, wp, rows_g):
    """One grid step = one image (or one group of patch rows of one image).

    x_ref : (C, rows_g*P_h, W)    raw NCHW slab (input dtype)
    s_ref : (P_w*Wp, W)   bf16    0/1 lane de-interleave matrix (constant)
    w_ref : (K, E)        bf16    projection weight, rows ordered (pw, c, ph)
    b_ref : (1, E)        f32     bias
    o_ref : (rows_g*Wp, E)        output rows for this slab
    x2_s  : (C*P_h, W)    bf16    scratch: channel-stacked slab of 1 patch row
    p_s   : (Wp, K)       bf16    scratch: patches tile of 1 patch row
    """
    cph = in_chans * p_h
    x_blk = x_ref[...].astype(jnp.bfloat16)        # (C, rows_g*P_h, W)
    s_t = s_ref[...]                               # (P_w*Wp, W)
    w = w_ref[...]                                 # (K, E)
    bias = b_ref[...]                              # (1, E) f32

    for r in range(rows_g):                        # static loop over patch rows
        # ---- stack channels for this patch row: x2[(c,ph), w] ----
        for c in range(in_chans):
            x2_s[c * p_h:(c + 1) * p_h, :] = x_blk[c, r * p_h:(r + 1) * p_h, :]
        x2 = x2_s[...]                             # (C*P_h, W) bf16

        # ---- lane de-interleave on the MXU (contract last dim of both):
        #      yt[pw*Wp + col, c*P_h + ph] = x[c, r*P_h + ph, col*P_w + pw]
        yt = lax.dot_general(
            s_t, x2,
            dimension_numbers=(((1,), (1,)), ((), ())),
            preferred_element_type=jnp.float32,
        ).astype(jnp.bfloat16)                     # (P_w*Wp, C*P_h); exact (0/1 matrix)

        # ---- regroup to the patches tile (Wp, K), K ordered (pw, c, ph) ----
        for pw in range(p_w):
            p_s[:, pw * cph:(pw + 1) * cph] = yt[pw * wp:(pw + 1) * wp, :]
        patches = p_s[...]                         # (Wp, K) bf16

        # ---- projection + bias (f32 accumulation) ----
        out_r = jnp.dot(patches, w, preferred_element_type=jnp.float32) + bias
        o_ref[r * wp:(r + 1) * wp, :] = out_r.astype(o_ref.dtype)


def _num_row_groups(batch, hp, p_h, wp):
    """>=2 grid steps for v7x megacore when it does not break block alignment."""
    if batch >= 2 or hp < 2:
        return 1
    if hp % 2 == 0:
        rows_g = hp // 2
        # conservative: keep both tiled block dims 16-aligned for any dtype
        if (rows_g * p_h) % 16 == 0 and (rows_g * wp) % 16 == 0:
            return 2
    return 1


# ------------------------------ Module wrapper ----------------------------- #
class PatchEmbed:
    """JAX/Pallas equivalent of the PyTorch ASiT PatchEmbed module."""

    def __init__(self, img_size=16, patch_size=4, in_chans=4, embed_dim=32,
                 *, key=None, dtype=jnp.float32, out_dtype=None):
        self.img_size = (img_size, img_size)
        self.patch_size = (patch_size, patch_size)
        self.num_patches = (img_size // patch_size) * (img_size // patch_size)
        self.in_chans = in_chans
        self.embed_dim = embed_dim
        self.out_dtype = out_dtype           # None -> same dtype as the input

        if key is None:
            key = jax.random.PRNGKey(0)
        k_w, k_b = jax.random.split(key)
        # Match PyTorch Conv2d defaults: kaiming_uniform(a=sqrt(5)) ==
        # U(-1/sqrt(fan_in), 1/sqrt(fan_in)) for both weight and bias.
        fan_in = in_chans * patch_size * patch_size
        bound = 1.0 / (fan_in ** 0.5)
        self.weight = jax.random.uniform(
            k_w, (embed_dim, in_chans, patch_size, patch_size),
            minval=-bound, maxval=bound, dtype=dtype)
        self.bias = jax.random.uniform(
            k_b, (embed_dim,), minval=-bound, maxval=bound, dtype=dtype)

        # One-time kernel weight layout: conv weight [E, C, Ph, Pw] ->
        # [K, E] with K-rows ordered (pw, c, ph) (matches the in-kernel
        # regrouping), bf16 for the MXU.  Bias kept in f32.
        p_h, p_w = self.patch_size
        self._w_ke = (jnp.transpose(self.weight, (3, 1, 2, 0))
                      .reshape(p_w * in_chans * p_h, embed_dim)
                      .astype(jnp.bfloat16))
        self._b_1e = self.bias.astype(jnp.float32).reshape(1, embed_dim)

    @staticmethod
    def _selection_matrix(width, p_w, wp):
        # s_t[pw*Wp + col, w] = 1  iff  w == col*P_w + pw
        rows = jnp.arange(p_w * wp)
        target = (rows % wp) * p_w + rows // wp
        return (target[:, None] == jnp.arange(width)[None, :]).astype(jnp.bfloat16)

    def __call__(self, x):
        # x: [B, C, H, W]  (NCHW, matching PyTorch)
        B, C, H, W = x.shape
        p_h, p_w = self.patch_size
        assert C == self.in_chans
        assert H % p_h == 0 and W % p_w == 0, "spatial dims must be divisible by patch size"
        hp, wp = H // p_h, W // p_w
        n_patches = hp * wp
        E = self.embed_dim
        K = C * p_h * p_w
        out_dtype = x.dtype if self.out_dtype is None else self.out_dtype

        s_t = self._selection_matrix(W, p_w, wp)       # (P_w*Wp, W) bf16, tiny

        n_groups = _num_row_groups(B, hp, p_h, wp)
        rows_g = hp // n_groups
        hg = rows_g * p_h                              # image rows per grid step
        ng = rows_g * wp                               # output rows per grid step

        kernel = functools.partial(
            _patch_embed_kernel,
            in_chans=C, p_h=p_h, p_w=p_w, wp=wp, rows_g=rows_g)

        out = pl.pallas_call(
            kernel,
            out_shape=jax.ShapeDtypeStruct((B, n_patches, E), out_dtype),
            grid_spec=pltpu.PrefetchScalarGridSpec(
                num_scalar_prefetch=0,
                grid=(B, n_groups),
                in_specs=[
                    # raw NCHW slab, read straight from HBM (fused extraction)
                    pl.BlockSpec((None, C, hg, W), lambda b, g: (b, 0, g, 0)),
                    # constants: resident, index never changes -> not re-fetched
                    pl.BlockSpec((p_w * wp, W), lambda b, g: (0, 0)),
                    pl.BlockSpec((K, E), lambda b, g: (0, 0)),
                    pl.BlockSpec((1, E), lambda b, g: (0, 0)),
                ],
                out_specs=pl.BlockSpec((None, ng, E), lambda b, g: (b, g, 0)),
                scratch_shapes=[
                    pltpu.VMEM((C * p_h, W), jnp.bfloat16),
                    pltpu.VMEM((wp, K), jnp.bfloat16),
                ],
            ),
            compiler_params=pltpu.CompilerParams(
                dimension_semantics=("parallel", "parallel"),
            ),
        )(x, s_t, self._w_ke, self._b_1e)
        return out                                      # [B, N, E]


# --------------------------------- reference -------------------------------- #
def _reference(x, weight, bias, patch_size):
    y = lax.conv_general_dilated(
        x, weight,
        window_strides=(patch_size, patch_size),
        padding="VALID",
        dimension_numbers=("NCHW", "OIHW", "NCHW"),
    ) + bias[None, :, None, None]
    B, E, hp, wp = y.shape
    return jnp.transpose(y.reshape(B, E, hp * wp), (0, 2, 1))


if __name__ == "__main__":
    key = jax.random.PRNGKey(0)
    k_x, k_p = jax.random.split(key)

    B, C, H, W = 2, 4, 16, 16
    P, E = 4, 32

    x = jax.random.normal(k_x, (B, C, H, W), dtype=jnp.float32)

    module = PatchEmbed(img_size=H, patch_size=P, in_chans=C, embed_dim=E, key=k_p)
    out = jax.block_until_ready(module(x))

    ref = _reference(x, module.weight, module.bias, P)
    assert out.shape == (B, (H // P) * (W // P), E), out.shape
    # bf16 operands with f32 accumulation -> compare against the f32 conv
    # reference at bf16-rounding tolerance.
    assert jnp.allclose(out, ref, atol=5e-2, rtol=5e-2), \
        float(jnp.max(jnp.abs(out - ref)))

    print("KERNEL_OK")
</pallas_src>

<mosaic_0001>
module attributes {stable_mosaic.version = 11 : i64} {
  func.func @_patch_embed_kernel(%arg0: i32, %arg1: i32, %arg2: memref<1x4x16x16xf32, #tpu.memory_space<vmem>>, %arg3: memref<16x16xbf16, #tpu.memory_space<vmem>>, %arg4: memref<64x32xbf16, #tpu.memory_space<vmem>>, %arg5: memref<1x32xf32, #tpu.memory_space<vmem>>, %arg6: memref<1x16x32xf32, #tpu.memory_space<vmem>>, %arg7: memref<16x16xbf16, #tpu.memory_space<vmem>>, %arg8: memref<4x64xbf16, #tpu.memory_space<vmem>>) attributes {dimension_semantics = [#tpu.dimension_semantics<parallel>, #tpu.dimension_semantics<parallel>], iteration_bounds = array<i64: 2, 1>, scalar_prefetch = 0 : i64, scratch_operands = 2 : i64, tpu.core_type = #tpu.core_type<tc>, window_params = [{transform_indices = @transform_0, window_bounds = array<i64: 1, 4, 16, 16>}, {pipeline_mode = #tpu.pipeline_mode<synchronous>, transform_indices = @transform_1, window_bounds = array<i64: 16, 16>}, {pipeline_mode = #tpu.pipeline_mode<synchronous>, transform_indices = @transform_2, window_bounds = array<i64: 64, 32>}, {pipeline_mode = #tpu.pipeline_mode<synchronous>, transform_indices = @transform_3, window_bounds = array<i64: 1, 32>}, {transform_indices = @transform_4, window_bounds = array<i64: 1, 16, 32>}]} {
    %c0 = arith.constant 0 : index
    %c0_0 = arith.constant 0 : index
    %c0_1 = arith.constant 0 : index
    %c0_2 = arith.constant 0 : index
    %0 = vector.load %arg2[%c0, %c0_0, %c0_1, %c0_2] : memref<1x4x16x16xf32, #tpu.memory_space<vmem>>, vector<1x4x16x16xf32>
    %1 = vector.shape_cast %0 : vector<1x4x16x16xf32> to vector<4x16x16xf32>
    %2 = arith.truncf %1 : vector<4x16x16xf32> to vector<4x16x16xbf16>
    %c0_3 = arith.constant 0 : index
    %c0_4 = arith.constant 0 : index
    %3 = vector.load %arg3[%c0_3, %c0_4] : memref<16x16xbf16, #tpu.memory_space<vmem>>, vector<16x16xbf16>
    %c0_5 = arith.constant 0 : index
    %c0_6 = arith.constant 0 : index
    %4 = vector.load %arg4[%c0_5, %c0_6] : memref<64x32xbf16, #tpu.memory_space<vmem>>, vector<64x32xbf16>
    %c0_7 = arith.constant 0 : index
    %c0_8 = arith.constant 0 : index
    %5 = vector.load %arg5[%c0_7, %c0_8] : memref<1x32xf32, #tpu.memory_space<vmem>>, vector<1x32xf32>
    %6 = vector.extract_strided_slice %2 {offsets = [0, 0, 0], sizes = [1, 4, 16], strides = [1, 1, 1]} : vector<4x16x16xbf16> to vector<1x4x16xbf16>
    %7 = vector.shape_cast %6 : vector<1x4x16xbf16> to vector<4x16xbf16>
    %c0_9 = arith.constant 0 : index
    %c0_10 = arith.constant 0 : index
    %8 = vector.load %arg7[%c0_9, %c0_10] : memref<16x16xbf16, #tpu.memory_space<vmem>>, vector<4x16xbf16>
    tpu.vector_store %arg7[%c0_9, %c0_10], %7 {strides = array<i32>} : memref<16x16xbf16, #tpu.memory_space<vmem>>, vector<4x16xbf16>,
    %9 = vector.extract_strided_slice %2 {offsets = [1, 0, 0], sizes = [1, 4, 16], strides = [1, 1, 1]} : vector<4x16x16xbf16> to vector<1x4x16xbf16>
    %10 = vector.shape_cast %9 : vector<1x4x16xbf16> to vector<4x16xbf16>
    %c4 = arith.constant 4 : index
    %c0_11 = arith.constant 0 : index
    %11 = vector.load %arg7[%c4, %c0_11] : memref<16x16xbf16, #tpu.memory_space<vmem>>, vector<4x16xbf16>
    tpu.vector_store %arg7[%c4, %c0_11], %10 {strides = array<i32>} : memref<16x16xbf16, #tpu.memory_space<vmem>>, vector<4x16xbf16>,
    %12 = vector.extract_strided_slice %2 {offsets = [2, 0, 0], sizes = [1, 4, 16], strides = [1, 1, 1]} : vector<4x16x16xbf16> to vector<1x4x16xbf16>
    %13 = vector.shape_cast %12 : vector<1x4x16xbf16> to vector<4x16xbf16>
    %c8 = arith.constant 8 : index
    %c0_12 = arith.constant 0 : index
    %14 = vector.load %arg7[%c8, %c0_12] : memref<16x16xbf16, #tpu.memory_space<vmem>>, vector<4x16xbf16>
    tpu.vector_store %arg7[%c8, %c0_12], %13 {strides = array<i32>} : memref<16x16xbf16, #tpu.memory_space<vmem>>, vector<4x16xbf16>,
    %15 = vector.extract_strided_slice %2 {offsets = [3, 0, 0], sizes = [1, 4, 16], strides = [1, 1, 1]} : vector<4x16x16xbf16> to vector<1x4x16xbf16>
    %16 = vector.shape_cast %15 : vector<1x4x16xbf16> to vector<4x16xbf16>
    %c12 = arith.constant 12 : index
    %c0_13 = arith.constant 0 : index
    %17 = vector.load %arg7[%c12, %c0_13] : memref<16x16xbf16, #tpu.memory_space<vmem>>, vector<4x16xbf16>
    tpu.vector_store %arg7[%c12, %c0_13], %16 {strides = array<i32>} : memref<16x16xbf16, #tpu.memory_space<vmem>>, vector<4x16xbf16>,
    %c0_14 = arith.constant 0 : index
    %c0_15 = arith.constant 0 : index
    %18 = vector.load %arg7[%c0_14, %c0_15] : memref<16x16xbf16, #tpu.memory_space<vmem>>, vector<16x16xbf16>
    %cst = arith.constant dense<0.000000e+00> : vector<16x16xf32>
    %19 = tpu.matmul %3, %18, %cst {dimension_numbers = #tpu.dot_dimension_numbers<[1], [1], [0], [0], [0, 0, 1, 0], [], []>} : vector<16x16xbf16>, vector<16x16xbf16>, vector<16x16xf32> -> vector<16x16xf32>
    %20 = arith.truncf %19 : vector<16x16xf32> to vector<16x16xbf16>
    %21 = vector.extract_strided_slice %20 {offsets = [0, 0], sizes = [4, 16], strides = [1, 1]} : vector<16x16xbf16> to vector<4x16xbf16>
    %c0_16 = arith.constant 0 : index
    %c0_17 = arith.constant 0 : index
    %22 = vector.load %arg8[%c0_16, %c0_17] : memref<4x64xbf16, #tpu.memory_space<vmem>>, vector<4x16xbf16>
    tpu.vector_store %arg8[%c0_16, %c0_17], %21 {strides = array<i32>} : memref<4x64xbf16, #tpu.memory_space<vmem>>, vector<4x16xbf16>,
    %23 = vector.extract_strided_slice %20 {offsets = [4, 0], sizes = [4, 16], strides = [1, 1]} : vector<16x16xbf16> to vector<4x16xbf16>
    %c0_18 = arith.constant 0 : index
    %c16 = arith.constant 16 : index
    %24 = vector.load %arg8[%c0_18, %c16] : memref<4x64xbf16, #tpu.memory_space<vmem>>, vector<4x16xbf16>
    tpu.vector_store %arg8[%c0_18, %c16], %23 {strides = array<i32>} : memref<4x64xbf16, #tpu.memory_space<vmem>>, vector<4x16xbf16>,
    %25 = vector.extract_strided_slice %20 {offsets = [8, 0], sizes = [4, 16], strides = [1, 1]} : vector<16x16xbf16> to vector<4x16xbf16>
    %c0_19 = arith.constant 0 : index
    %c32 = arith.constant 32 : index
    %26 = vector.load %arg8[%c0_19, %c32] : memref<4x64xbf16, #tpu.memory_space<vmem>>, vector<4x16xbf16>
    tpu.vector_store %arg8[%c0_19, %c32], %25 {strides = array<i32>} : memref<4x64xbf16, #tpu.memory_space<vmem>>, vector<4x16xbf16>,
    %27 = vector.extract_strided_slice %20 {offsets = [12, 0], sizes = [4, 16], strides = [1, 1]} : vector<16x16xbf16> to vector<4x16xbf16>
    %c0_20 = arith.constant 0 : index
    %c48 = arith.constant 48 : index
    %28 = vector.load %arg8[%c0_20, %c48] : memref<4x64xbf16, #tpu.memory_space<vmem>>, vector<4x16xbf16>
    tpu.vector_store %arg8[%c0_20, %c48], %27 {strides = array<i32>} : memref<4x64xbf16, #tpu.memory_space<vmem>>, vector<4x16xbf16>,
    %c0_21 = arith.constant 0 : index
    %c0_22 = arith.constant 0 : index
    %29 = vector.load %arg8[%c0_21, %c0_22] : memref<4x64xbf16, #tpu.memory_space<vmem>>, vector<4x64xbf16>
    %cst_23 = arith.constant dense<0.000000e+00> : vector<4x32xf32>
    %30 = tpu.matmul %29, %4, %cst_23 {dimension_numbers = #tpu.dot_dimension_numbers<[1], [0], [0], [1], [0, 0, 1, 1], [], []>} : vector<4x64xbf16>, vector<64x32xbf16>, vector<4x32xf32> -> vector<4x32xf32>
    %31 = vector.broadcast %5 : vector<1x32xf32> to vector<4x32xf32>
    %32 = arith.addf %30, %31 : vector<4x32xf32>
    %c0_24 = arith.constant 0 : index
    %c0_25 = arith.constant 0 : index
    %c0_26 = arith.constant 0 : index
    %33 = vector.load %arg6[%c0_24, %c0_25, %c0_26] : memref<1x16x32xf32, #tpu.memory_space<vmem>>, vector<1x4x32xf32>
    %34 = vector.shape_cast %33 : vector<1x4x32xf32> to vector<4x32xf32>
    %35 = vector.shape_cast %32 : vector<4x32xf32> to vector<1x4x32xf32>
    tpu.vector_store %arg6[%c0_24, %c0_25, %c0_26], %35 {strides = array<i32>} : memref<1x16x32xf32, #tpu.memory_space<vmem>>, vector<1x4x32xf32>,
    %36 = vector.extract_strided_slice %2 {offsets = [0, 4, 0], sizes = [1, 4, 16], strides = [1, 1, 1]} : vector<4x16x16xbf16> to vector<1x4x16xbf16>
    %37 = vector.shape_cast %36 : vector<1x4x16xbf16> to vector<4x16xbf16>
    %c0_27 = arith.constant 0 : index
    %c0_28 = arith.constant 0 : index
    %38 = vector.load %arg7[%c0_27, %c0_28] : memref<16x16xbf16, #tpu.memory_space<vmem>>, vector<4x16xbf16>
    tpu.vector_store %arg7[%c0_27, %c0_28], %37 {strides = array<i32>} : memref<16x16xbf16, #tpu.memory_space<vmem>>, vector<4x16xbf16>,
    %39 = vector.extract_strided_slice %2 {offsets = [1, 4, 0], sizes = [1, 4, 16], strides = [1, 1, 1]} : vector<4x16x16xbf16> to vector<1x4x16xbf16>
    %40 = vector.shape_cast %39 : vector<1x4x16xbf16> to vector<4x16xbf16>
    %c4_29 = arith.constant 4 : index
    %c0_30 = arith.constant 0 : index
    %41 = vector.load %arg7[%c4_29, %c0_30] : memref<16x16xbf16, #tpu.memory_space<vmem>>, vector<4x16xbf16>
    tpu.vector_store %arg7[%c4_29, %c0_30], %40 {strides = array<i32>} : memref<16x16xbf16, #tpu.memory_space<vmem>>, vector<4x16xbf16>,
    %42 = vector.extract_strided_slice %2 {offsets = [2, 4, 0], sizes = [1, 4, 16], strides = [1, 1, 1]} : vector<4x16x16xbf16> to vector<1x4x16xbf16>
    %43 = vector.shape_cast %42 : vector<1x4x16xbf16> to vector<4x16xbf16>
    %c8_31 = arith.constant 8 : index
    %c0_32 = arith.constant 0 : index
    %44 = vector.load %arg7[%c8_31, %c0_32] : memref<16x16xbf16, #tpu.memory_space<vmem>>, vector<4x16xbf16>
    tpu.vector_store %arg7[%c8_31, %c0_32], %43 {strides = array<i32>} : memref<16x16xbf16, #tpu.memory_space<vmem>>, vector<4x16xbf16>,
    %45 = vector.extract_strided_slice %2 {offsets = [3, 4, 0], sizes = [1, 4, 16], strides = [1, 1, 1]} : vector<4x16x16xbf16> to vector<1x4x16xbf16>
    %46 = vector.shape_cast %45 : vector<1x4x16xbf16> to vector<4x16xbf16>
    %c12_33 = arith.constant 12 : index
    %c0_34 = arith.constant 0 : index
    %47 = vector.load %arg7[%c12_33, %c0_34] : memref<16x16xbf16, #tpu.memory_space<vmem>>, vector<4x16xbf16>
    tpu.vector_store %arg7[%c12_33, %c0_34], %46 {strides = array<i32>} : memref<16x16xbf16, #tpu.memory_space<vmem>>, vector<4x16xbf16>,
    %c0_35 = arith.constant 0 : index
    %c0_36 = arith.constant 0 : index
    %48 = vector.load %arg7[%c0_35, %c0_36] : memref<16x16xbf16, #tpu.memory_space<vmem>>, vector<16x16xbf16>
    %cst_37 = arith.constant dense<0.000000e+00> : vector<16x16xf32>
    %49 = tpu.matmul %3, %48, %cst_37 {dimension_numbers = #tpu.dot_dimension_numbers<[1], [1], [0], [0], [0, 0, 1, 0], [], []>} : vector<16x16xbf16>, vector<16x16xbf16>, vector<16x16xf32> -> vector<16x16xf32>
    %50 = arith.truncf %49 : vector<16x16xf32> to vector<16x16xbf16>
    %51 = vector.extract_strided_slice %50 {offsets = [0, 0], sizes = [4, 16], strides = [1, 1]} : vector<16x16xbf16> to vector<4x16xbf16>
    %c0_38 = arith.constant 0 : index
    %c0_39 = arith.constant 0 : index
    %52 = vector.load %arg8[%c0_38, %c0_39] : memref<4x64xbf16, #tpu.memory_space<vmem>>, vector<4x16xbf16>
    tpu.vector_store %arg8[%c0_38, %c0_39], %51 {strides = array<i32>} : memref<4x64xbf16, #tpu.memory_space<vmem>>, vector<4x16xbf16>,
    %53 = vector.extract_strided_slice %50 {offsets = [4, 0], sizes = [4, 16], strides = [1, 1]} : vector<16x16xbf16> to vector<4x16xbf16>
    %c0_40 = arith.constant 0 : index
    %c16_41 = arith.constant 16 : index
    %54 = vector.load %arg8[%c0_40, %c16_41] : memref<4x64xbf16, #tpu.memory_space<vmem>>, vector<4x16xbf16>
    tpu.vector_store %arg8[%c0_40, %c16_41], %53 {strides = array<i32>} : memref<4x64xbf16, #tpu.memory_space<vmem>>, vector<4x16xbf16>,
    %55 = vector.extract_strided_slice %50 {offsets = [8, 0], sizes = [4, 16], strides = [1, 1]} : vector<16x16xbf16> to vector<4x16xbf16>
    %c0_42 = arith.constant 0 : index
    %c32_43 = arith.constant 32 : index
    %56 = vector.load %arg8[%c0_42, %c32_43] : memref<4x64xbf16, #tpu.memory_space<vmem>>, vector<4x16xbf16>
    tpu.vector_store %arg8[%c0_42, %c32_43], %55 {strides = array<i32>} : memref<4x64xbf16, #tpu.memory_space<vmem>>, vector<4x16xbf16>,
    %57 = vector.extract_strided_slice %50 {offsets = [12, 0], sizes = [4, 16], strides = [1, 1]} : vector<16x16xbf16> to vector<4x16xbf16>
    %c0_44 = arith.constant 0 : index
    %c48_45 = arith.constant 48 : index
    %58 = vector.load %arg8[%c0_44, %c48_45] : memref<4x64xbf16, #tpu.memory_space<vmem>>, vector<4x16xbf16>
    tpu.vector_store %arg8[%c0_44, %c48_45], %57 {strides = array<i32>} : memref<4x64xbf16, #tpu.memory_space<vmem>>, vector<4x16xbf16>,
    %c0_46 = arith.constant 0 : index
    %c0_47 = arith.constant 0 : index
    %59 = vector.load %arg8[%c0_46, %c0_47] : memref<4x64xbf16, #tpu.memory_space<vmem>>, vector<4x64xbf16>
    %cst_48 = arith.constant dense<0.000000e+00> : vector<4x32xf32>
    %60 = tpu.matmul %59, %4, %cst_48 {dimension_numbers = #tpu.dot_dimension_numbers<[1], [0], [0], [1], [0, 0, 1, 1], [], []>} : vector<4x64xbf16>, vector<64x32xbf16>, vector<4x32xf32> -> vector<4x32xf32>
    %61 = vector.broadcast %5 : vector<1x32xf32> to vector<4x32xf32>
    %62 = arith.addf %60, %61 : vector<4x32xf32>
    %c0_49 = arith.constant 0 : index
    %c4_50 = arith.constant 4 : index
    %c0_51 = arith.constant 0 : index
    %63 = vector.load %arg6[%c0_49, %c4_50, %c0_51] : memref<1x16x32xf32, #tpu.memory_space<vmem>>, vector<1x4x32xf32>
    %64 = vector.shape_cast %63 : vector<1x4x32xf32> to vector<4x32xf32>
    %65 = vector.shape_cast %62 : vector<4x32xf32> to vector<1x4x32xf32>
    tpu.vector_store %arg6[%c0_49, %c4_50, %c0_51], %65 {strides = array<i32>} : memref<1x16x32xf32, #tpu.memory_space<vmem>>, vector<1x4x32xf32>,
    %66 = vector.extract_strided_slice %2 {offsets = [0, 8, 0], sizes = [1, 4, 16], strides = [1, 1, 1]} : vector<4x16x16xbf16> to vector<1x4x16xbf16>
    %67 = vector.shape_cast %66 : vector<1x4x16xbf16> to vector<4x16xbf16>
    %c0_52 = arith.constant 0 : index
    %c0_53 = arith.constant 0 : index
    %68 = vector.load %arg7[%c0_52, %c0_53] : memref<16x16xbf16, #tpu.memory_space<vmem>>, vector<4x16xbf16>
    tpu.vector_store %arg7[%c0_52, %c0_53], %67 {strides = array<i32>} : memref<16x16xbf16, #tpu.memory_space<vmem>>, vector<4x16xbf16>,
    %69 = vector.extract_strided_slice %2 {offsets = [1, 8, 0], sizes = [1, 4, 16], strides = [1, 1, 1]} : vector<4x16x16xbf16> to vector<1x4x16xbf16>
    %70 = vector.shape_cast %69 : vector<1x4x16xbf16> to vector<4x16xbf16>
    %c4_54 = arith.constant 4 : index
    %c0_55 = arith.constant 0 : index
    %71 = vector.load %arg7[%c4_54, %c0_55] : memref<16x16xbf16, #tpu.memory_space<vmem>>, vector<4x16xbf16>
    tpu.vector_store %arg7[%c4_54, %c0_55], %70 {strides = array<i32>} : memref<16x16xbf16, #tpu.memory_space<vmem>>, vector<4x16xbf16>,
    %72 = vector.extract_strided_slice %2 {offsets = [2, 8, 0], sizes = [1, 4, 16], strides = [1, 1, 1]} : vector<4x16x16xbf16> to vector<1x4x16xbf16>
    %73 = vector.shape_cast %72 : vector<1x4x16xbf16> to vector<4x16xbf16>
    %c8_56 = arith.constant 8 : index
    %c0_57 = arith.constant 0 : index
    %74 = vector.load %arg7[%c8_56, %c0_57] : memref<16x16xbf16, #tpu.memory_space<vmem>>, vector<4x16xbf16>
    tpu.vector_store %arg7[%c8_56, %c0_57], %73 {strides = array<i32>} : memref<16x16xbf16, #tpu.memory_space<vmem>>, vector<4x16xbf16>,
    %75 = vector.extract_strided_slice %2 {offsets = [3, 8, 0], sizes = [1, 4, 16], strides = [1, 1, 1]} : vector<4x16x16xbf16> to vector<1x4x16xbf16>
    %76 = vector.shape_cast %75 : vector<1x4x16xbf16> to vector<4x16xbf16>
    %c12_58 = arith.constant 12 : index
    %c0_59 = arith.constant 0 : index
    %77 = vector.load %arg7[%c12_58, %c0_59] : memref<16x16xbf16, #tpu.memory_space<vmem>>, vector<4x16xbf16>
    tpu.vector_store %arg7[%c12_58, %c0_59], %76 {strides = array<i32>} : memref<16x16xbf16, #tpu.memory_space<vmem>>, vector<4x16xbf16>,
    %c0_60 = arith.constant 0 : index
    %c0_61 = arith.constant 0 : index
    %78 = vector.load %arg7[%c0_60, %c0_61] : memref<16x16xbf16, #tpu.memory_space<vmem>>, vector<16x16xbf16>
    %cst_62 = arith.constant dense<0.000000e+00> : vector<16x16xf32>
    %79 = tpu.matmul %3, %78, %cst_62 {dimension_numbers = #tpu.dot_dimension_numbers<[1], [1], [0], [0], [0, 0, 1, 0], [], []>} : vector<16x16xbf16>, vector<16x16xbf16>, vector<16x16xf32> -> vector<16x16xf32>
    %80 = arith.truncf %79 : vector<16x16xf32> to vector<16x16xbf16>
    %81 = vector.extract_strided_slice %80 {offsets = [0, 0], sizes = [4, 16], strides = [1, 1]} : vector<16x16xbf16> to vector<4x16xbf16>
    %c0_63 = arith.constant 0 : index
    %c0_64 = arith.constant 0 : index
    %82 = vector.load %arg8[%c0_63, %c0_64] : memref<4x64xbf16, #tpu.memory_space<vmem>>, vector<4x16xbf16>
    tpu.vector_store %arg8[%c0_63, %c0_64], %81 {strides = array<i32>} : memref<4x64xbf16, #tpu.memory_space<vmem>>, vector<4x16xbf16>,
    %83 = vector.extract_strided_slice %80 {offsets = [4, 0], sizes = [4, 16], strides = [1, 1]} : vector<16x16xbf16> to vector<4x16xbf16>
    %c0_65 = arith.constant 0 : index
    %c16_66 = arith.constant 16 : index
    %84 = vector.load %arg8[%c0_65, %c16_66] : memref<4x64xbf16, #tpu.memory_space<vmem>>, vector<4x16xbf16>
    tpu.vector_store %arg8[%c0_65, %c16_66], %83 {strides = array<i32>} : memref<4x64xbf16, #tpu.memory_space<vmem>>, vector<4x16xbf16>,
    %85 = vector.extract_strided_slice %80 {offsets = [8, 0], sizes = [4, 16], strides = [1, 1]} : vector<16x16xbf16> to vector<4x16xbf16>
    %c0_67 = arith.constant 0 : index
    %c32_68 = arith.constant 32 : index
    %86 = vector.load %arg8[%c0_67, %c32_68] : memref<4x64xbf16, #tpu.memory_space<vmem>>, vector<4x16xbf16>
    tpu.vector_store %arg8[%c0_67, %c32_68], %85 {strides = array<i32>} : memref<4x64xbf16, #tpu.memory_space<vmem>>, vector<4x16xbf16>,
    %87 = vector.extract_strided_slice %80 {offsets = [12, 0], sizes = [4, 16], strides = [1, 1]} : vector<16x16xbf16> to vector<4x16xbf16>
    %c0_69 = arith.constant 0 : index
    %c48_70 = arith.constant 48 : index
    %88 = vector.load %arg8[%c0_69, %c48_70] : memref<4x64xbf16, #tpu.memory_space<vmem>>, vector<4x16xbf16>
    tpu.vector_store %arg8[%c0_69, %c48_70], %87 {strides = array<i32>} : memref<4x64xbf16, #tpu.memory_space<vmem>>, vector<4x16xbf16>,
    %c0_71 = arith.constant 0 : index
    %c0_72 = arith.constant 0 : index
    %89 = vector.load %arg8[%c0_71, %c0_72] : memref<4x64xbf16, #tpu.memory_space<vmem>>, vector<4x64xbf16>
    %cst_73 = arith.constant dense<0.000000e+00> : vector<4x32xf32>
    %90 = tpu.matmul %89, %4, %cst_73 {dimension_numbers = #tpu.dot_dimension_numbers<[1], [0], [0], [1], [0, 0, 1, 1], [], []>} : vector<4x64xbf16>, vector<64x32xbf16>, vector<4x32xf32> -> vector<4x32xf32>
    %91 = vector.broadcast %5 : vector<1x32xf32> to vector<4x32xf32>
    %92 = arith.addf %90, %91 : vector<4x32xf32>
    %c0_74 = arith.constant 0 : index
    %c8_75 = arith.constant 8 : index
    %c0_76 = arith.constant 0 : index
    %93 = vector.load %arg6[%c0_74, %c8_75, %c0_76] : memref<1x16x32xf32, #tpu.memory_space<vmem>>, vector<1x4x32xf32>
    %94 = vector.shape_cast %93 : vector<1x4x32xf32> to vector<4x32xf32>
    %95 = vector.shape_cast %92 : vector<4x32xf32> to vector<1x4x32xf32>
    tpu.vector_store %arg6[%c0_74, %c8_75, %c0_76], %95 {strides = array<i32>} : memref<1x16x32xf32, #tpu.memory_space<vmem>>, vector<1x4x32xf32>,
    %96 = vector.extract_strided_slice %2 {offsets = [0, 12, 0], sizes = [1, 4, 16], strides = [1, 1, 1]} : vector<4x16x16xbf16> to vector<1x4x16xbf16>
    %97 = vector.shape_cast %96 : vector<1x4x16xbf16> to vector<4x16xbf16>
    %c0_77 = arith.constant 0 : index
    %c0_78 = arith.constant 0 : index
    %98 = vector.load %arg7[%c0_77, %c0_78] : memref<16x16xbf16, #tpu.memory_space<vmem>>, vector<4x16xbf16>
    tpu.vector_store %arg7[%c0_77, %c0_78], %97 {strides = array<i32>} : memref<16x16xbf16, #tpu.memory_space<vmem>>, vector<4x16xbf16>,
    %99 = vector.extract_strided_slice %2 {offsets = [1, 12, 0], sizes = [1, 4, 16], strides = [1, 1, 1]} : vector<4x16x16xbf16> to vector<1x4x16xbf16>
    %100 = vector.shape_cast %99 : vector<1x4x16xbf16> to vector<4x16xbf16>
    %c4_79 = arith.constant 4 : index
    %c0_80 = arith.constant 0 : index
    %101 = vector.load %arg7[%c4_79, %c0_80] : memref<16x16xbf16, #tpu.memory_space<vmem>>, vector<4x16xbf16>
    tpu.vector_store %arg7[%c4_79, %c0_80], %100 {strides = array<i32>} : memref<16x16xbf16, #tpu.memory_space<vmem>>, vector<4x16xbf16>,
    %102 = vector.extract_strided_slice %2 {offsets = [2, 12, 0], sizes = [1, 4, 16], strides = [1, 1, 1]} : vector<4x16x16xbf16> to vector<1x4x16xbf16>
    %103 = vector.shape_cast %102 : vector<1x4x16xbf16> to vector<4x16xbf16>
    %c8_81 = arith.constant 8 : index
    %c0_82 = arith.constant 0 : index
    %104 = vector.load %arg7[%c8_81, %c0_82] : memref<16x16xbf16, #tpu.memory_space<vmem>>, vector<4x16xbf16>
    tpu.vector_store %arg7[%c8_81, %c0_82], %103 {strides = array<i32>} : memref<16x16xbf16, #tpu.memory_space<vmem>>, vector<4x16xbf16>,
    %105 = vector.extract_strided_slice %2 {offsets = [3, 12, 0], sizes = [1, 4, 16], strides = [1, 1, 1]} : vector<4x16x16xbf16> to vector<1x4x16xbf16>
    %106 = vector.shape_cast %105 : vector<1x4x16xbf16> to vector<4x16xbf16>
    %c12_83 = arith.constant 12 : index
    %c0_84 = arith.constant 0 : index
    %107 = vector.load %arg7[%c12_83, %c0_84] : memref<16x16xbf16, #tpu.memory_space<vmem>>, vector<4x16xbf16>
    tpu.vector_store %arg7[%c12_83, %c0_84], %106 {strides = array<i32>} : memref<16x16xbf16, #tpu.memory_space<vmem>>, vector<4x16xbf16>,
    %c0_85 = arith.constant 0 : index
    %c0_86 = arith.constant 0 : index
    %108 = vector.load %arg7[%c0_85, %c0_86] : memref<16x16xbf16, #tpu.memory_space<vmem>>, vector<16x16xbf16>
    %cst_87 = arith.constant dense<0.000000e+00> : vector<16x16xf32>
    %109 = tpu.matmul %3, %108, %cst_87 {dimension_numbers = #tpu.dot_dimension_numbers<[1], [1], [0], [0], [0, 0, 1, 0], [], []>} : vector<16x16xbf16>, vector<16x16xbf16>, vector<16x16xf32> -> vector<16x16xf32>
    %110 = arith.truncf %109 : vector<16x16xf32> to vector<16x16xbf16>
    %111 = vector.extract_strided_slice %110 {offsets = [0, 0], sizes = [4, 16], strides = [1, 1]} : vector<16x16xbf16> to vector<4x16xbf16>
    %c0_88 = arith.constant 0 : index
    %c0_89 = arith.constant 0 : index
    %112 = vector.load %arg8[%c0_88, %c0_89] : memref<4x64xbf16, #tpu.memory_space<vmem>>, vector<4x16xbf16>
    tpu.vector_store %arg8[%c0_88, %c0_89], %111 {strides = array<i32>} : memref<4x64xbf16, #tpu.memory_space<vmem>>, vector<4x16xbf16>,
    %113 = vector.extract_strided_slice %110 {offsets = [4, 0], sizes = [4, 16], strides = [1, 1]} : vector<16x16xbf16> to vector<4x16xbf16>
    %c0_90 = arith.constant 0 : index
    %c16_91 = arith.constant 16 : index
    %114 = vector.load %arg8[%c0_90, %c16_91] : memref<4x64xbf16, #tpu.memory_space<vmem>>, vector<4x16xbf16>
    tpu.vector_store %arg8[%c0_90, %c16_91], %113 {strides = array<i32>} : memref<4x64xbf16, #tpu.memory_space<vmem>>, vector<4x16xbf16>,
    %115 = vector.extract_strided_slice %110 {offsets = [8, 0], sizes = [4, 16], strides = [1, 1]} : vector<16x16xbf16> to vector<4x16xbf16>
    %c0_92 = arith.constant 0 : index
    %c32_93 = arith.constant 32 : index
    %116 = vector.load %arg8[%c0_92, %c32_93] : memref<4x64xbf16, #tpu.memory_space<vmem>>, vector<4x16xbf16>
    tpu.vector_store %arg8[%c0_92, %c32_93], %115 {strides = array<i32>} : memref<4x64xbf16, #tpu.memory_space<vmem>>, vector<4x16xbf16>,
    %117 = vector.extract_strided_slice %110 {offsets = [12, 0], sizes = [4, 16], strides = [1, 1]} : vector<16x16xbf16> to vector<4x16xbf16>
    %c0_94 = arith.constant 0 : index
    %c48_95 = arith.constant 48 : index
    %118 = vector.load %arg8[%c0_94, %c48_95] : memref<4x64xbf16, #tpu.memory_space<vmem>>, vector<4x16xbf16>
    tpu.vector_store %arg8[%c0_94, %c48_95], %117 {strides = array<i32>} : memref<4x64xbf16, #tpu.memory_space<vmem>>, vector<4x16xbf16>,
    %c0_96 = arith.constant 0 : index
    %c0_97 = arith.constant 0 : index
    %119 = vector.load %arg8[%c0_96, %c0_97] : memref<4x64xbf16, #tpu.memory_space<vmem>>, vector<4x64xbf16>
    %cst_98 = arith.constant dense<0.000000e+00> : vector<4x32xf32>
    %120 = tpu.matmul %119, %4, %cst_98 {dimension_numbers = #tpu.dot_dimension_numbers<[1], [0], [0], [1], [0, 0, 1, 1], [], []>} : vector<4x64xbf16>, vector<64x32xbf16>, vector<4x32xf32> -> vector<4x32xf32>
    %121 = vector.broadcast %5 : vector<1x32xf32> to vector<4x32xf32>
    %122 = arith.addf %120, %121 : vector<4x32xf32>
    %c0_99 = arith.constant 0 : index
    %c12_100 = arith.constant 12 : index
    %c0_101 = arith.constant 0 : index
    %123 = vector.load %arg6[%c0_99, %c12_100, %c0_101] : memref<1x16x32xf32, #tpu.memory_space<vmem>>, vector<1x4x32xf32>
    %124 = vector.shape_cast %123 : vector<1x4x32xf32> to vector<4x32xf32>
    %125 = vector.shape_cast %122 : vector<4x32xf32> to vector<1x4x32xf32>
    tpu.vector_store %arg6[%c0_99, %c12_100, %c0_101], %125 {strides = array<i32>} : memref<1x16x32xf32, #tpu.memory_space<vmem>>, vector<1x4x32xf32>,
    return
  }
  func.func @transform_0(%arg0: i32, %arg1: i32) -> (i32, i32, i32, i32) {
    %c0_i32 = arith.constant 0 : i32
    %c0_i32_0 = arith.constant 0 : i32
    %c0_i32_1 = arith.constant 0 : i32
    return %arg0, %c0_i32, %arg1, %c0_i32_0 : i32, i32, i32, i32
  }
  func.func @transform_1(%arg0: i32, %arg1: i32) -> (i32, i32) {
    %c0_i32 = arith.constant 0 : i32
    %c0_i32_0 = arith.constant 0 : i32
    %c0_i32_1 = arith.constant 0 : i32
    return %c0_i32, %c0_i32_0 : i32, i32
  }
  func.func @transform_2(%arg0: i32, %arg1: i32) -> (i32, i32) {
    %c0_i32 = arith.constant 0 : i32
    %c0_i32_0 = arith.constant 0 : i32
    %c0_i32_1 = arith.constant 0 : i32
    return %c0_i32, %c0_i32_0 : i32, i32
  }
  func.func @transform_3(%arg0: i32, %arg1: i32) -> (i32, i32) {
    %c0_i32 = arith.constant 0 : i32
    %c0_i32_0 = arith.constant 0 : i32
    %c0_i32_1 = arith.constant 0 : i32
    return %c0_i32, %c0_i32_0 : i32, i32
  }
  func.func @transform_4(%arg0: i32, %arg1: i32) -> (i32, i32, i32) {
    %c0_i32 = arith.constant 0 : i32
    %c0_i32_0 = arith.constant 0 : i32
    return %arg0, %arg1, %c0_i32 : i32, i32, i32
  }
}

</mosaic_0001>

<bundles_post_ra>
// kernel: tpu_custom_call.1
= control target key start
LH: loop header
LB: loop body
LE: loop exit
PB: predicated region body
PF: predicated region fallthrough
CT: control target
= control target key end

     0   :  { %9 = vsyncpa [#allocation5], 0  ;;  %s1673_s0 = inlined_call_operand.hbm [shape: f32[2,4,16,16], index: 0, kind: input, shape index: {}]   ;;  %s1674_s1 = inlined_call_operand.vmem [shape: bf16[16,16], index: 1, kind: input, shape index: {}]   ;;  %s1675_s2 = inlined_call_operand.vmem [shape: bf16[64,32], index: 2, kind: input, shape index: {}]   ;;  %s1676_s3 = inlined_call_operand.vmem [shape: f32[1,32], index: 3, kind: input, shape index: {}]   ;;  %s1677_s4 = inlined_call_operand.hbm [shape: f32[2,16,32], index: 4, kind: output, shape index: {}]  }
   0x1   :  { %11 = vsyncpa [#allocation5 + $0x1], 0 }
   0x2   :  { %12 = vsyncpa [#allocation6], 0 }
   0x3   :  { %14 = vsyncpa [#allocation6 + $0x1], 0  ;;  %s1306_s15 = smov 0   ;;  %s1308_s16 = smov 0  }
   0x4   :  { %s1310_s17 = smov 0   ;;  %s1312_s18 = smov 0  }
   0x5   :  { %s1314_s19 = smov 0   ;;  %s1316_s20 = smov 0  }
   0x6 LB: > { %s943_s21 = sadd.s32 4294967295, %s1267_s20   ;;  %s944_s22 = sadd.s32 4294967294, %s1267_s20   ;;  %s1267_s20 = sphi %s1316_s20, %s20_s20   ;;  %s1263_s19 = sphi %s1314_s19, %s1692_s19   ;;  %s1259_s18 = sphi %s1312_s18, %s1691_s18   ;;  %s1255_s17 = sphi %s1310_s17, %s1690_s17   ;;  %s1251_s16 = sphi %s1308_s16, %s1689_s16   ;;  %s1247_s15 = sphi %s1306_s15, %s1688_s15  }
   0x7   : > { %s32_s23 = sadd.s32 1, %s1263_s19  ;;  %s41_s24 = sadd.s32 1, %s1255_s17 }
   0x8   : > { %p34_p0 = scmp.ge.s32.totalorder %s32_s23, 2  ;;  %p48_p1 = scmp.ne.s32.totalorder %s1255_s17, %s1251_s16 }
   0x9   : > { %p49_p2 = scmp.eq.s32.totalorder %s1267_s20, 0  ;;  %p54_p3 = scmp.ne.s32.totalorder %s1251_s16, %s1247_s15 }
   0xa   : > { %s1694_s23 = smov (%p34_p0, %s32_s23), 0  ;;  %p55_p5 = scmp.eq.s32.totalorder %s943_s21, 0 }
   0xb   : > { %p1347_p4 = por %p49_p2, %p48_p1  ;;  %s36_s26 = ssub.s32 %s1263_s19, %s1694_s23 }
   0xc   : > { %p143_p6 = scmp.eq.s32.totalorder %s943_s21, 1  ;;  %p39_p7 = scmp.eq.s32.totalorder %s36_s26, 0 }
   0xd   : > { %p1353_p8 = por %p55_p5, %p54_p3  ;;  %p149_p10 = scmp.eq.s32.totalorder %s944_s22, 1 }
   0xe   : > { %p1357_p9 = por %p143_p6, %p48_p1  ;;  %p1090_p13 = scmp.lt.s32.totalorder %s1267_s20, 2 }
   0xf   : > { %s1362_s29 = scalar_select %p39_p7, %s1255_s17, %s41_s24  }
  0x10   : > { %s1681_s28 = scalar_select %p1357_p9, 1, 0 }
  0x11   : > { %p1364_p11 = por %p149_p10, %p54_p3  ;;  %s178_s5 = sand.u32 1, %s1255_s17  }
  0x12   : > { %s947_s6 = sshll.u32 %s178_s5, 6  ;;  %s976_s7 = sshll.u32 %s1263_s19, 10 }
  0x13   : > { %s1682_s30 = scalar_select %p1364_p11, 1, 0 }
  0x14   : > { %s1375_s10 = scalar_lea.hbm %s1673_s0, %s976_s7  ;;  %s182_s11 = scalar_lea.vmem [#allocation4], %s947_s6 }
  0x15   : > { %s191_s12 = sshll.u32 %s182_s11, 4  ;;  %p1381_p0 = pnand %p1090_p13, %p1347_p4  ;;  %s1377_s12 = int_to_ptr.vmem [resolvable:$true] %s191_s12 }
  0x16   : > { %s1386_s14 = scalar_lea.sflag [#allocation5], %s178_s5  ;;  %s1155_s21 = scalar_lea.hbm %s1375_s10, 1024 }
  0x17   : > { %p1156_p2 = scmp.ne.s32.totalorder %s1375_s10, %s1155_s21  ;;  %p1157_p3 = pneg %p1381_p0 }
  0x18   : > { %s1160_s25 = scalar_lea.hbm %s1673_s0, 2048  ;;  %p1161_p4 = scmp.lt.u32.totalorder %s1375_s10, %s1673_s0 }
  0x19   : > { %p1158_p5 = pnand %p1157_p3, %p1156_p2  ;;  %p1162_p7 = scmp.lt.u32.totalorder %s1160_s25, %s1155_s21 }
  0x1a   : > { %p1164_p13 = scmp.lt.u32.totalorder %s1155_s21, %s1375_s10 }
  0x1b   : > { %p1159_p6 = pneg %p1158_p5  ;;  %p1163_p10 = por %p1162_p7, %p1161_p4 }
  0x1d   : > { %p1165_p12 = por %p1164_p13, %p1163_p10 }
  0x1f   : > { %p1166_p1 = pnand %p1165_p12, %p1159_p6 }
  0x21   : > { %1169 = shalt.err (!%p1166_p1)
}
  0x22   : > { %s1170_s5 = scalar_lea.vmem %s1377_s12, 1024  ;;  %s1269_s7 = smov [#allocation4]  }
  0x23   : > { %p1171_p2 = scmp.ne.s32.totalorder %s1377_s12, %s1170_s5  ;;  %s1175_s8 = sshll.u32 %s1269_s7, 4  ;;  %s1176_s8 = int_to_ptr.vmem [resolvable:$false] %s1175_s8 }
  0x24   : > { %s1177_s9 = scalar_lea.vmem %s1176_s8, 2048  ;;  %p1178_p9 = scmp.lt.s32.totalorder %s1377_s12, %s1176_s8 }
  0x25   : > { %p1173_p5 = pnand %p1171_p2, %p1157_p3  ;;  %p1179_p4 = scmp.lt.s32.totalorder %s1177_s9, %s1170_s5 }
  0x27   : > { %p1174_p11 = pneg %p1173_p5  ;;  %p1180_p7 = por %p1179_p4, %p1178_p9 }
  0x29   : > { %p1181_p10 = pnand %p1180_p7, %p1174_p11 }
  0x2b   : > { %1184 = shalt.err (!%p1181_p10)
}
  0x2c   : > { %s1270_s11 = smov 128   ;;  %s1271_s21 = smov 8  }
  0x2d   : > { %1085 = dma.hbm_to_vmem [thread:$0]  (!%p1381_p0), %s1375_s10, 1024, %s1377_s12, %s1386_s14, %s1270_s11, %s1270_s11, %s1271_s21  }
  0x2e   : > { %p199_p12 = scmp.lt.s32.totalorder %s1267_s20, 3  ;;  %p1684_p1 = scmp.ge.s32.totalorder %s1267_s20, 1 }
  0x30   : > { %p200_p3 = pnand %p1684_p1, %p199_p12 }
  0x31   : > { %s1418_s22 = sand.u32 (!%p200_p3), 1, %s1251_s16  }
  0x32   : > { %203 = sbr.rel (%p200_p3) target bundleno = 1025 (0x401), region = 36  ;;  %s951_s24 = sshll.u32 (!%p200_p3), %s1418_s22, 6 }
  0x33   : > { %s206_s25 = scalar_lea.sflag (!%p200_p3), [#allocation5], %s1418_s22  ;;  %s209_s26 = scalar_lea.vmem (!%p200_p3), [#allocation4], %s951_s24 }
  0x39   : > { %1238 = dma.done.wait (%p1353_p8), %s206_s25, 1024  }
  0x3a   : > { %1240 = vsyncadd (%p1353_p8), %s206_s25, 4294966272  ;;  %v1272_v0 = vmov 0.0   ;;  %vm1273_vm0 = vmmov 0   ;;  %v237_v1 = vld [vmem:[%s209_s26] sm:$0xff]  ;;  %v238_v2 = vld [vmem:[%s209_s26 + $0x8] sm:$0xff]  ;;  %vm260_vm1 = vcmask 123904   ;;  %v337_v28 = vlaneseq }
  0x3b   : > { %1006 = vmatprep.subr.bf16.mxu1 %v1272_v0  ;;  %1024 = vmatprep.subr.bf16.mxu0 %v1272_v0  ;;  %v239_v3 = vld [vmem:[%s209_s26 + $0x10] sm:$0xff]  ;;  %v240_v4 = vld [vmem:[%s209_s26 + $0x18] sm:$0xff]  ;;  %v241_v5 = vld [vmem:[%s209_s26 + $0x20] sm:$0xff]  ;;  %v1432_v7 = vpack.c.bf16 %v238_v2, %v237_v1  ;;  %vm265_vm2 = vcmask 125954   ;;  %vm270_vm3 = vcmask 128004   ;;  %vm275_vm4 = vcmask 130054  }
  0x3c   : > { %1008 = vmatprep.mubr.msk.bf16.mxu1 %vm1273_vm0, %v1272_v0  ;;  %1026 = vmatprep.mubr.msk.bf16.mxu0 %vm1273_vm0, %v1272_v0  ;;  %v242_v6 = vld [vmem:[%s209_s26 + $0x28] sm:$0xff]  ;;  %v243_v8 = vld [vmem:[%s209_s26 + $0x30] sm:$0xff]  ;;  %v244_v9 = vld [vmem:[%s209_s26 + $0x38] sm:$0xff]  ;;  %v1434_v10 = vpack.c.bf16 %v240_v4, %v239_v3  ;;  %vm283_vm5 = vcmask 130048   ;;  %v1274_v26 = vmov 1983009808  }
  0x3d   : > { %v1436_v11 = vpack.c.bf16 %v242_v6, %v241_v5  ;;  %v1438_v12 = vpack.c.bf16 %v244_v9, %v243_v8  ;;  %261 = vst.msk [vmem:[#allocation2] sm:$0x3] %vm260_vm1, %v1432_v7  ;;  %v444_v16 = vrot.slane %v1432_v7, 2  ;;  %v1461_v21 = vld [vmem:[%s1674_s1] sm:$0xff]   ;;  %v1484_v25 = vld [vmem:[%s1675_s2 + $0x8] sm:$0xff]   ;;  %v335_v27 = vunpack.c.l.s4 %v1274_v26  ;;  %v1496_v29 = vld [vmem:[%s1675_s2 + $0x10] sm:$0xff]  }
  0x3e   : > { %v263_v13 = vrot.slane %v1434_v10, 6  ;;  %v1478_v24 = vld [vmem:[%s1675_s2] sm:$0xff]   ;;  %v338_v31 = vshrl.u32 %v337_v28, 7  ;;  %v1505_v32 = vld [vmem:[%s1675_s2 + $0x18] sm:$0xff]   ;;  %v576_v33 = vrot.slane %v1432_v7, 4  ;;  %v579_v34 = vrot.slane %v1434_v10, 2 }
  0x3f   : > { %v268_v14 = vrot.slane %v1436_v11, 4  ;;  %v273_v15 = vrot.slane %v1438_v12, 2  ;;  %v448_v17 = vrot.slane %v1436_v11, 6  ;;  %v451_v18 = vrot.slane %v1438_v12, 4  ;;  %s1275_s11 = smov 48   ;;  %s1276_s21 = smov 16  }
  0x40   : > { %266 = vst.msk [vmem:[#allocation2] sm:$0xc] %vm265_vm2, %v263_v13  ;;  %v336_v30 = vunpack.c.0.s8 %v335_v27  ;;  %v583_v35 = vrot.slane %v1438_v12, 6  ;;  %v708_v51 = vrot.slane %v1432_v7, 6  ;;  %v711_v52 = vrot.slane %v1434_v10, 4  ;;  %s1277_s24 = smov 32  }
  0x41   : > { %271 = vst.msk [vmem:[#allocation2] sm:$0x30] %vm270_vm3, %v268_v14  ;;  %v714_v53 = vrot.slane %v1436_v11, 2  ;;  %vm345_vm6 = vcmask 255104   ;;  %vm358_vm7 = vcmask 386304   ;;  %vm364_vm8 = vcmask 517504  }
  0x42   : > { %276 = vst.msk [vmem:[#allocation2] sm:$0xc0] %vm275_vm4, %v273_v15  ;;  %v1510_v38 = vsub.s32 %v336_v30, %v338_v31  ;;  %vm397_vm9 = vcmask 523264   ;;  %s952_s25 = sshll.u32 %s1418_s22, 4  ;;  %v1581_v9 = vld [vmem:[%s1676_s3] ss:$0 sm:$0xff] }
  0x43   : > { %vm441_vm10 = vcmask 257024   ;;  %s1584_s10 = scalar_lea.vmem [#allocation7], %s952_s25  ;;  %s977_s13 = sshll.u32 %s1259_s18, 8 }
  0x44   : > { %s856_s12 = sshll.u32 %s1584_s10, 4  ;;  %s1621_s5 = scalar_lea.hbm %s1677_s4, %s977_s13  ;;  %s1616_s12 = int_to_ptr.vmem [resolvable:$true] %s856_s12 }
  0x45   : > { %s841_s7 = scalar_lea.sflag [#allocation6], %s1418_s22  ;;  %s1185_s18 = scalar_lea.vmem %s1616_s12, 256 }
  0x46   : > { %p1186_p8 = scmp.ne.s32.totalorder %s1616_s12, %s1185_s18  ;;  %p1685_p9 = scmp.ne.s32.totalorder %s1681_s28, 0 }
  0x47   : > { %s1278_s8 = smov [#allocation7]  }
  0x48   : > { %p1187_p11 = pnand %p1186_p8, %p1685_p9  ;;  %s1189_s9 = sshll.u32 %s1278_s8, 4  ;;  %s1190_s9 = int_to_ptr.vmem [resolvable:$false] %s1189_s9 }
  0x49   : > { %v277_v19 = vld [vmem:[#allocation2] sm:$0xff]  ;;  %p1192_p6 = scmp.lt.s32.totalorder %s1616_s12, %s1190_s9 }
  0x4a   : > { %v288_v20 = vsel %vm283_vm5, %v277_v19, 0  ;;  %447 = vst.msk [vmem:[#allocation2] sm:$0xc] %vm265_vm2, %v1434_v10  ;;  %p1188_p0 = pneg %p1187_p11 }
  0x4b   : > { %446 = vst.msk [vmem:[#allocation2] sm:$0x3] %vm260_vm1, %v444_v16  ;;  %1007 = vmatpush3.bf16.xpose.msra.mxu1 %v288_v20 }
  0x4c   : > { %450 = vst.msk [vmem:[#allocation2] sm:$0x30] %vm270_vm3, %v448_v17  ;;  %1012 = vmatprep.subr.bf16.mxu1 %v1272_v0 }
  0x4d   : > { %453 = vst.msk [vmem:[#allocation2] sm:$0xc0] %vm275_vm4, %v451_v18 }
  0x52   : > { %1009 = vmatmul.mubr.msk.bf16.vlgmr.msra.gmra.mrb[0].mxu1 %vm283_vm5, %v1461_v21 }
  0x53   : > { %1020 = vmatprep.mubr.msk.bf16.mxu1 %vm1273_vm0, %v1272_v0  ;;  %1013 = vmatpush3.bf16.msra.mxu1 %v1478_v24 }
  0x54   : > { %v454_v22 = vld [vmem:[#allocation2] sm:$0xff]  ;;  %1014 = vmatprep.subr.bf16.mxu1 %v1272_v0 }
  0x55   : > { %v456_v23 = vsel %vm283_vm5, %v454_v22, 0  ;;  %582 = vst.msk [vmem:[#allocation2] sm:$0x30] %vm270_vm3, %v1436_v11 }
  0x56   : > { %1025 = vmatpush3.bf16.xpose.msra.mxu0 %v456_v23  ;;  %578 = vst.msk [vmem:[#allocation2] sm:$0x3] %vm260_vm1, %v576_v33 }
  0x57   : > { %1030 = vmatprep.subr.bf16.mxu0 %v1272_v0  ;;  %1015 = vmatpush3.bf16.msra.mxu1 %v1484_v25  ;;  %581 = vst.msk [vmem:[#allocation2] sm:$0xc] %vm265_vm2, %v579_v34 }
  0x58   : > { %1016 = vmatprep.subr.bf16.mxu1 %v1272_v0  ;;  %585 = vst.msk [vmem:[#allocation2] sm:$0xc0] %vm275_vm4, %v583_v35 }
  0x5b   : > { %1017 = vmatpush3.bf16.msra.mxu1 %v1496_v29 }
  0x5c   : > { %1018 = vmatprep.subr.bf16.mxu1 %v1272_v0 }
  0x5d   : > { %1027 = vmatmul.mubr.msk.bf16.vlgmr.msra.gmra.mrb[0].mxu0 %vm283_vm5, %v1461_v21 }
  0x5e   : > { %1038 = vmatprep.mubr.msk.bf16.mxu0 %vm1273_vm0, %v1272_v0  ;;  %1031 = vmatpush3.bf16.msra.mxu0 %v1478_v24 }
  0x5f   : > { %1032 = vmatprep.subr.bf16.mxu0 %v1272_v0  ;;  %1019 = vmatpush3.bf16.msra.mxu1 %v1505_v32  ;;  %v586_v48 = vld [vmem:[#allocation2] sm:$0xff] }
  0x60   : > { %1042 = vmatprep.subr.bf16.mxu1 %v1272_v0  ;;  %717 = vst.msk [vmem:[#allocation2] sm:$0xc0] %vm275_vm4, %v1438_v12  ;;  %v588_v2 = vsel %vm283_vm5, %v586_v48, 0 }
  0x61   : > { %710 = vst.msk [vmem:[#allocation2] sm:$0x3] %vm260_vm1, %v708_v51 }
  0x62   : > { %1033 = vmatpush3.bf16.msra.mxu0 %v1484_v25  ;;  %713 = vst.msk [vmem:[#allocation2] sm:$0xc] %vm265_vm2, %v711_v52 }
  0x63   : > { %1034 = vmatprep.subr.bf16.mxu0 %v1272_v0  ;;  %716 = vst.msk [vmem:[#allocation2] sm:$0x30] %vm270_vm3, %v714_v53 }
  0x66   : > { %1035 = vmatpush3.bf16.msra.mxu0 %v1496_v29 }
  0x67   : > { %1036 = vmatprep.subr.bf16.mxu0 %v1272_v0 }
  0x6a   : > { %1037 = vmatpush3.bf16.msra.mxu0 %v1505_v32  ;;  %v718_v6 = vld [vmem:[#allocation2] sm:$0xff] }
  0x6b   : > { %1060 = vmatprep.subr.bf16.mxu0 %v1272_v0  ;;  %v720_v7 = vsel %vm283_vm5, %v718_v6, 0 }
 0x125   : > { %v324_v36 = vpop.f32.mrb[0].mxu1 }
 0x126   : > { %v1010_v37 = vpop.f32.mrb[1].mxu1 }
 0x127   : > { %v327_v39 = vpop.f32.mrb[2].mxu1 }
 0x128   : > { %v331_v40 = vpack.c.bf16 %v327_v39, %v324_v36  ;;  %v955_v41 = vpack.c.bf16 %v327_v39, %v327_v39  ;;  %v1011_v42 = vpop.f32.mrb[3].mxu1 }
 0x12a   : > { %332 = vst.msk [vmem:[#allocation3] sm:$0x3] %vm260_vm1, %v331_v40  ;;  %v354_v43 = vrot.slane %v955_v41, %v1510_v38  ;;  %v340_v44 = vrot.slane %v331_v40, %v1510_v38 }
 0x12c   : > { %v360_v45 = vcombine.high %v354_v43, %v354_v43  ;;  %v341_v46 = vcombine.high %v340_v44, %v340_v44 }
 0x12e   : > { %361 = vrot.lane.b32.xlu1 %v360_v45, %s1275_s11  ;;  %342 = vrot.lane.b32.xlu0 %v341_v46, %s1276_s21 }
 0x130   : > { %v492_v47 = vpop.f32.mrb[0].mxu0 }
 0x131   : > { %v1028_v49 = vpop.f32.mrb[1].mxu0 }
 0x132   : > { %v495_v50 = vpop.f32.mrb[2].mxu0  ;;  %355 = vrot.lane.b32.xlu0 %v354_v43, %s1277_s24 }
 0x133   : > { %v499_v54 = vpack.c.bf16 %v495_v50, %v492_v47  ;;  %v963_v55 = vpack.c.bf16 %v495_v50, %v495_v50  ;;  %v1029_v56 = vpop.f32.mrb[3].mxu0 }
 0x135   : > { %v508_v57 = vrot.slane %v499_v54, %v1510_v38  ;;  %v521_v58 = vrot.slane %v963_v55, %v1510_v38 }
 0x137   : > { %v509_v59 = vcombine.high %v508_v57, %v508_v57  ;;  %522 = vrot.lane.b32.xlu0 %v521_v58, %s1277_s24  ;;  %v526_v60 = vcombine.high %v521_v58, %v521_v58 }
 0x139   : > { %510 = vrot.lane.b32.xlu1 %v509_v59, %s1276_s21 }
 0x13d   : > { %527 = vrot.lane.b32.xlu1 %v526_v60, %s1275_s11 }
 0x1a0   : > { %v343_v61 = vpop.permute.xlu0 %342  ;;  %v362_v63 = vpop.permute.xlu1 %361 }
 0x1a1   : > { %346 = vst.msk [vmem:[#allocation3] sm:$0x3] %vm345_vm6, %v343_v61 }
 0x1a4   : > { %v356_v62 = vpop.permute.xlu0 %355 }
 0x1a5   : > { %359 = vst.msk [vmem:[#allocation3] sm:$0x3] %vm358_vm7, %v356_v62 }
 0x1a6   : > { %365 = vst.msk [vmem:[#allocation3] sm:$0x3] %vm364_vm8, %v362_v63 }
 0x1a9   : > { %v523_v4 = vpop.permute.xlu0 %522 }
 0x1ab   : > { %v511_v1 = vpop.permute.xlu1 %510 }
 0x1ad   : > { %v366_v3 = vld [vmem:[#allocation3] sm:$0x3] }
 0x1ae   : > { %500 = vst.msk [vmem:[#allocation3] sm:$0x3] %vm260_vm1, %v499_v54  ;;  %1021 = vmatmul.mubr.msk.bf16.vlgmr.msra.gmra.mrb[4].mxu1 %vm397_vm9, %v366_v3 }
 0x1af   : > { %513 = vst.msk [vmem:[#allocation3] sm:$0x3] %vm345_vm6, %v511_v1  ;;  %1043 = vmatpush3.bf16.xpose.msra.mxu1 %v588_v2  ;;  %1044 = vmatprep.mubr.msk.bf16.mxu1 %vm1273_vm0, %v1272_v0  ;;  %v528_v5 = vpop.permute.xlu1 %527 }
 0x1b0   : > { %525 = vst.msk [vmem:[#allocation3] sm:$0x3] %vm358_vm7, %v523_v4  ;;  %1048 = vmatprep.subr.bf16.mxu1 %v1272_v0 }
 0x1b1   : > { %530 = vst.msk [vmem:[#allocation3] sm:$0x3] %vm364_vm8, %v528_v5 }
 0x1b6   : > { %1045 = vmatmul.mubr.msk.bf16.vlgmr.msra.gmra.mrb[8].mxu1 %vm283_vm5, %v1461_v21 }
 0x1b7   : > { %1049 = vmatpush3.bf16.msra.mxu1 %v1478_v24  ;;  %1056 = vmatprep.mubr.msk.bf16.mxu1 %vm1273_vm0, %v1272_v0 }
 0x1b8   : > { %v531_v8 = vld [vmem:[#allocation3] sm:$0x3]  ;;  %1050 = vmatprep.subr.bf16.mxu1 %v1272_v0 }
 0x1b9   : > { %1039 = vmatmul.mubr.msk.bf16.vlgmr.msra.gmra.mrb[4].mxu0 %vm397_vm9, %v531_v8 }
 0x1ba   : > { %1061 = vmatpush3.bf16.xpose.msra.mxu0 %v720_v7  ;;  %1062 = vmatprep.mubr.msk.bf16.mxu0 %vm1273_vm0, %v1272_v0 }
 0x1bb   : > { %1051 = vmatpush3.bf16.msra.mxu1 %v1484_v25  ;;  %1066 = vmatprep.subr.bf16.mxu0 %v1272_v0 }
 0x1bc   : > { %1052 = vmatprep.subr.bf16.mxu1 %v1272_v0 }
 0x1bf   : > { %1053 = vmatpush3.bf16.msra.mxu1 %v1496_v29 }
 0x1c0   : > { %1054 = vmatprep.subr.bf16.mxu1 %v1272_v0 }
 0x1c1   : > { %1063 = vmatmul.mubr.msk.bf16.vlgmr.msra.gmra.mrb[8].mxu0 %vm283_vm5, %v1461_v21 }
 0x1c2   : > { %1067 = vmatpush3.bf16.msra.mxu0 %v1478_v24  ;;  %1074 = vmatprep.mubr.msk.bf16.mxu0 %vm1273_vm0, %v1272_v0 }
 0x1c3   : > { %1055 = vmatpush3.bf16.msra.mxu1 %v1505_v32  ;;  %1068 = vmatprep.subr.bf16.mxu0 %v1272_v0 }
 0x1c6   : > { %1069 = vmatpush3.bf16.msra.mxu0 %v1484_v25 }
 0x1c7   : > { %1070 = vmatprep.subr.bf16.mxu0 %v1272_v0 }
 0x1ca   : > { %1071 = vmatpush3.bf16.msra.mxu0 %v1496_v29 }
 0x1cb   : > { %1072 = vmatprep.subr.bf16.mxu0 %v1272_v0 }
 0x1ce   : > { %1073 = vmatpush3.bf16.msra.mxu0 %v1505_v32 }
 0x281   : > { %v435_v10 = vpop.f32.mrb[4].mxu1 }
 0x282   : > { %v436_v11 = vadd.f32 %v1581_v9, %v435_v10  ;;  %v1022_v12 = vpop.f32.mrb[5].mxu1 }
 0x283   : > { %v438_v13 = vpop.f32.mrb[6].mxu1 }
 0x284   : > { %442 = vst.msk [vmem:[%s1584_s10] sm:$0xf] %vm441_vm10, %v436_v11  ;;  %v1023_v0 = vpop.f32.mrb[7].mxu1 }
 0x289   : > { %v624_v14 = vpop.f32.mrb[8].mxu1 }
 0x28a   : > { %v1046_v15 = vpop.f32.mrb[9].mxu1 }
 0x28b   : > { %v627_v16 = vpop.f32.mrb[10].mxu1 }
 0x28c   : > { %v631_v17 = vpack.c.bf16 %v627_v16, %v624_v14  ;;  %v966_v18 = vpack.c.bf16 %v627_v16, %v627_v16  ;;  %v569_v19 = vpop.f32.mrb[4].mxu0  ;;  %v1047_v20 = vpop.f32.mrb[11].mxu1 }
 0x28d   : > { %v570_v21 = vadd.f32 %v1581_v9, %v569_v19  ;;  %v1040_v22 = vpop.f32.mrb[5].mxu0 }
 0x28e   : > { %v640_v23 = vrot.slane %v631_v17, %v1510_v38  ;;  %v653_v24 = vrot.slane %v966_v18, %v1510_v38  ;;  %632 = vst.msk [vmem:[#allocation3] sm:$0x3] %vm260_vm1, %v631_v17  ;;  %v572_v25 = vpop.f32.mrb[6].mxu0 }
 0x28f   : > { %575 = vst.msk [vmem:[%s1584_s10 + $0x4] sm:$0xf] %vm441_vm10, %v570_v21  ;;  %v1041_v26 = vpop.f32.mrb[7].mxu0 }
 0x290   : > { %654 = vrot.lane.b32.xlu1 %v653_v24, %s1277_s24  ;;  %v641_v27 = vcombine.high %v640_v23, %v640_v23  ;;  %v658_v29 = vcombine.high %v653_v24, %v653_v24 }
 0x292   : > { %642 = vrot.lane.b32.xlu0 %v641_v27, %s1276_s21 }
 0x294   : > { %v756_v28 = vpop.f32.mrb[8].mxu0 }
 0x295   : > { %v1064_v30 = vpop.f32.mrb[9].mxu0 }
 0x296   : > { %v759_v31 = vpop.f32.mrb[10].mxu0  ;;  %659 = vrot.lane.b32.xlu0 %v658_v29, %s1275_s11 }
 0x297   : > { %v763_v32 = vpack.c.bf16 %v759_v31, %v756_v28  ;;  %v969_v33 = vpack.c.bf16 %v759_v31, %v759_v31  ;;  %v1065_v34 = vpop.f32.mrb[11].mxu0 }
 0x299   : > { %v772_v35 = vrot.slane %v763_v32, %v1510_v38  ;;  %v785_v36 = vrot.slane %v969_v33, %v1510_v38 }
 0x29b   : > { %786 = vrot.lane.b32.xlu0 %v785_v36, %s1277_s24  ;;  %v773_v37 = vcombine.high %v772_v35, %v772_v35  ;;  %v790_v39 = vcombine.high %v785_v36, %v785_v36 }
 0x29d   : > { %774 = vrot.lane.b32.xlu1 %v773_v37, %s1276_s21 }
 0x2a1   : > { %791 = vrot.lane.b32.xlu1 %v790_v39, %s1275_s11  ;;  %s1191_s11 = scalar_lea.vmem %s1190_s9, 512 }
 0x2a2   : > { %p1193_p13 = scmp.lt.s32.totalorder %s1191_s11, %s1185_s18 }
 0x2a4   : > { %p1194_p2 = por %p1193_p13, %p1192_p6 }
 0x2a6   : > { %p1195_p5 = pnand %p1194_p2, %p1188_p0 }
 0x302   : > { %v655_v41 = vpop.permute.xlu1 %654 }
 0x304   : > { %v643_v40 = vpop.permute.xlu0 %642 }
 0x305   : > { %645 = vst.msk [vmem:[#allocation3] sm:$0x3] %vm345_vm6, %v643_v40 }
 0x306   : > { %657 = vst.msk [vmem:[#allocation3] sm:$0x3] %vm358_vm7, %v655_v41 }
 0x308   : > { %v660_v42 = vpop.permute.xlu0 %659 }
 0x309   : > { %662 = vst.msk [vmem:[#allocation3] sm:$0x3] %vm364_vm8, %v660_v42 }
 0x30d   : > { %v787_v44 = vpop.permute.xlu0 %786 }
 0x30f   : > { %v775_v43 = vpop.permute.xlu1 %774 }
 0x310   : > { %v663_v38 = vld [vmem:[#allocation3] sm:$0x3] }
 0x311   : > { %1057 = vmatmul.mubr.msk.bf16.vlgmr.msra.gmra.mrb[12].mxu1 %vm397_vm9, %v663_v38  ;;  %764 = vst.msk [vmem:[#allocation3] sm:$0x3] %vm260_vm1, %v763_v32 }
 0x312   : > { %777 = vst.msk [vmem:[#allocation3] sm:$0x3] %vm345_vm6, %v775_v43 }
 0x313   : > { %789 = vst.msk [vmem:[#allocation3] sm:$0x3] %vm358_vm7, %v787_v44  ;;  %v792_v45 = vpop.permute.xlu1 %791 }
 0x314   : > { %794 = vst.msk [vmem:[#allocation3] sm:$0x3] %vm364_vm8, %v792_v45 }
 0x31b   : > { %v795_v46 = vld [vmem:[#allocation3] sm:$0x3] }
 0x31c   : > { %1075 = vmatmul.mubr.msk.bf16.vlgmr.msra.gmra.mrb[12].mxu0 %vm397_vm9, %v795_v46 }
 0x3e4   : > { %v701_v47 = vpop.f32.mrb[12].mxu1 }
 0x3e5   : > { %v702_v48 = vadd.f32 %v1581_v9, %v701_v47  ;;  %v1058_v49 = vpop.f32.mrb[13].mxu1 }
 0x3e6   : > { %v704_v50 = vpop.f32.mrb[14].mxu1 }
 0x3e7   : > { %707 = vst.msk [vmem:[%s1584_s10 + $0x8] sm:$0xf] %vm441_vm10, %v702_v48  ;;  %v1059_v51 = vpop.f32.mrb[15].mxu1 }
 0x3ef   : > { %v833_v52 = vpop.f32.mrb[12].mxu0 }
 0x3f0   : > { %v834_v53 = vadd.f32 %v1581_v9, %v833_v52  ;;  %v1076_v54 = vpop.f32.mrb[13].mxu0 }
 0x3f1   : > { %v836_v55 = vpop.f32.mrb[14].mxu0 }
 0x3f2   : > { %839 = vst.msk [vmem:[%s1584_s10 + $0xc] sm:$0xf] %vm441_vm10, %v834_v53  ;;  %v1077_v56 = vpop.f32.mrb[15].mxu0 }
 0x3f3   : > { %1198 = shalt.err (!%p1195_p5)
}
 0x3f4   : > { %s1199_s21 = scalar_lea.hbm %s1621_s5, 256  ;;  %s1203_s26 = scalar_lea.hbm %s1677_s4, 512 }
 0x3f5   : > { %p1200_p4 = scmp.ne.s32.totalorder %s1621_s5, %s1199_s21  ;;  %p1204_p12 = scmp.lt.u32.totalorder %s1621_s5, %s1677_s4 }
 0x3f6   : > { %p1205_p1 = scmp.lt.u32.totalorder %s1203_s26, %s1199_s21  ;;  %p1207_p8 = scmp.lt.u32.totalorder %s1199_s21, %s1621_s5 }
 0x3f7   : > { %p1201_p7 = pnand %p1200_p4, %p1685_p9 }
 0x3f8   : > { %p1206_p3 = por %p1205_p1, %p1204_p12 }
 0x3f9   : > { %p1202_p10 = pneg %p1201_p7 }
 0x3fa   : > { %p1208_p11 = por %p1207_p8, %p1206_p3 }
 0x3fc   : > { %p1209_p0 = pnand %p1208_p11, %p1202_p10 }
 0x3fe   : > { %1212 = shalt.err (!%p1209_p0)
}
 0x3ff   : > { %s1279_s13 = smov 128   ;;  %s1280_s14 = smov 8  }
 0x400   : > { %1080 = dma.vmem_to_hbm [thread:$0]  (%p1685_p9), %s1616_s12, 256, %s1621_s5, %s841_s7, %s1279_s13, %s1279_s13, %s1280_s14  }
 0x401 PF: > { %s871_s6 = sand.u32 1, %s1247_s15   ;;  %p1686_p6 = scmp.ne.s32.totalorder %s1682_s30, 0 }
 0x402   : > { %p1687_p13 = scmp.ge.s32.totalorder %s1267_s20, 2  ;;  %s872_s18 = scalar_lea.sflag [#allocation6], %s871_s6 }
 0x404   : > { %p1087_p2 = pnand %p1687_p13, %p1686_p6 }
 0x406   : > { %1242 = dma.done.wait (!%p1087_p2), %s872_s18, 256  }
 0x407   : > { %1244 = vsyncadd (!%p1087_p2), %s872_s18, 4294967040  ;;  %s20_s20 = sadd.s32 1, %s1267_s20   ;;  %s1688_s15 = smov %s1251_s16 }
 0x408   : > { %p17_p5 = scmp.ge.s32.totalorder %s20_s20, 4   ;;  %s1689_s16 = smov %s1255_s17 }
 0x409   : > { %s1690_s17 = smov %s1362_s29  ;;  %s1691_s18 = smov %s1263_s19 }
 0x40a   : > { %s1692_s19 = smov %s1694_s23  ;;  %19 = sbr.rel (!%p17_p5) target bundleno = 6 (0x6), region = 81 }
 0x411   :  { %877 = vsyncpa [#allocation5], 1 }
 0x412   :  { %879 = vsyncpa [#allocation5 + $0x1], 1 }
 0x413   :  { %880 = vsyncpa [#allocation6], 1 }
 0x414   :  { %882 = vsyncpa [#allocation6 + $0x1], 1 }

</bundles_post_ra>
